<compile_context>
chip_gen: v7x
topology: tpu7x:2x2x1
jax: 0.10.0
libtpu: 0.0.40
codegen_flags: <defaults>
</compile_context>

<pallas_src>
import math

import jax
import jax.numpy as jnp
from jax.experimental import pallas as pl
from jax.experimental.pallas import tpu as pltpu

HIDDEN = 7  # fixed by the PyTorch module


def mlp_kernel(x_ref, w1_ref, b1_ref, w2_ref, b2_ref, w3_ref, b3_ref, o_ref):
    x = x_ref[...]
    h1 = jnp.tanh(
        jnp.dot(x, w1_ref[...], preferred_element_type=jnp.float32) + b1_ref[...]
    )
    h2 = jnp.tanh(
        jnp.dot(h1, w2_ref[...], preferred_element_type=jnp.float32) + b2_ref[...]
    )
    y = jnp.dot(h2, w3_ref[...], preferred_element_type=jnp.float32) + b3_ref[...]
    o_ref[...] = y.astype(o_ref.dtype)


def _round_up(v, m):
    return ((v + m - 1) // m) * m


def network_forward(x, params, *, tile_rows=1024):
    """x: (B, ...) flattened to (B, mu_len). Returns (B, N) float32."""
    w1, b1, w2, b2, w3, b3 = params
    B = x.shape[0]
    x2d = x.reshape(B, -1).astype(jnp.float32)     # mirrors x.view(x.shape[0], -1)
    mu_len = x2d.shape[1]
    N = w3.shape[1]

    # Lane-packing group size: G batch rows share one lane-dense row.
    g = 128 // math.gcd(mu_len, 128)
    # Cap the kron() weight blow-up; fall back to the un-packed layout if the
    # expanded weights would stop being "tiny & VMEM-resident".
    exp_elems = (g * mu_len) * (g * HIDDEN) + (g * HIDDEN) ** 2 + (g * HIDDEN) * (g * N)
    if exp_elems * 4 > (8 << 20):
        g = 1

    # Pad batch to a multiple of g only (at most g-1 rows).  Tile-level
    # raggedness is handled by Pallas' masked partial blocks, not by padding.
    b_pad = _round_up(B, g)
    if b_pad != B:
        x2d = jnp.pad(x2d, ((0, b_pad - B), (0, 0)))
    R = b_pad // g
    w_in, w_out = g * mu_len, g * N

    xp = x2d.reshape(R, w_in)                       # bitwise-free (row-major)

    if g > 1:
        eye = jnp.eye(g, dtype=jnp.float32)
        w1p, w2p, w3p = jnp.kron(eye, w1), jnp.kron(eye, w2), jnp.kron(eye, w3)
        b1p, b2p, b3p = jnp.tile(b1, (1, g)), jnp.tile(b2, (1, g)), jnp.tile(b3, (1, g))
    else:
        w1p, w2p, w3p, b1p, b2p, b3p = w1, w2, w3, b1, b2, b3

    # Tile rows: multiple of 8, and >= 2 grid steps whenever R allows it
    # (keeps both v7x TensorCores busy); capped at tile_rows for VMEM budget.
    tile_rows = max(8, (tile_rows // 8) * 8)
    tile_r = max(8, min(tile_rows, _round_up(pl.cdiv(R, 2), 8)))
    if tile_r >= R:
        tile_r = R                                  # single full (unmasked) block
    grid_r = pl.cdiv(R, tile_r)

    def const_spec(a):
        # Whole array as one block, same block every grid step -> DMA'd once,
        # resident in VMEM for the whole grid.
        return pl.BlockSpec(a.shape, lambda i: (0, 0))

    out = pl.pallas_call(
        mlp_kernel,
        out_shape=jax.ShapeDtypeStruct((R, w_out), jnp.float32),
        grid=(grid_r,),
        in_specs=[
            pl.BlockSpec((tile_r, w_in), lambda i: (i, 0)),   # lane-dense input
            const_spec(w1p), const_spec(b1p),
            const_spec(w2p), const_spec(b2p),
            const_spec(w3p), const_spec(b3p),
        ],
        out_specs=pl.BlockSpec((tile_r, w_out), lambda i: (i, 0)),  # lane-dense out
        compiler_params=pltpu.CompilerParams(
            dimension_semantics=("parallel",),      # shard batch tiles across TCs
            vmem_limit_bytes=32 * 1024 * 1024,      # >= working set on all gens
        ),
    )(xp, w1p, b1p, w2p, b2p, w3p, b3p)

    y = out.reshape(b_pad, N)                       # bitwise-free reshape back
    return y if b_pad == B else y[:B]


def init_params(key, mu_len, N):
    """Deterministic synthetic parameters (PyTorch-Linear shaped, transposed)."""
    ks = jax.random.split(key, 6)

    def lin(kw, kb, fan_in, fan_out):
        bound = 1.0 / math.sqrt(fan_in)
        w = jax.random.uniform(kw, (fan_in, fan_out), jnp.float32, -bound, bound)
        b = jax.random.uniform(kb, (1, fan_out), jnp.float32, -bound, bound)
        return w, b

    w1, b1 = lin(ks[0], ks[1], mu_len, HIDDEN)
    w2, b2 = lin(ks[2], ks[3], HIDDEN, HIDDEN)
    w3, b3 = lin(ks[4], ks[5], HIDDEN, N)
    return (w1, b1, w2, b2, w3, b3)


def _reference(x, params):
    w1, b1, w2, b2, w3, b3 = params
    x2d = x.reshape(x.shape[0], -1).astype(jnp.float32)
    h = jnp.tanh(x2d @ w1 + b1)
    h = jnp.tanh(h @ w2 + b2)
    return h @ w3 + b3


if __name__ == "__main__":
    key = jax.random.PRNGKey(0)
    k_x, k_p = jax.random.split(key)

    mu_len, N = 4, 16
    params = init_params(k_p, mu_len, N)

    # Case 1: B multiple of the lane-pack group (32) but not of the tile ->
    # exercises the masked partial last block and a 2-step grid.
    B1 = 416
    x1 = jax.random.normal(k_x, (B1, mu_len), jnp.float32)
    out1 = network_forward(x1, params)
    jax.block_until_ready(out1)
    assert out1.shape == (B1, N)
    assert jnp.allclose(out1, _reference(x1, params), atol=1e-5), "mismatch (B=416)"

    # Case 2: ragged batch (250 -> padded to 256 for lane packing only).
    B2 = 250
    x2 = jax.random.normal(jax.random.fold_in(k_x, 1), (B2, mu_len), jnp.float32)
    out2 = network_forward(x2, params)
    jax.block_until_ready(out2)
    assert out2.shape == (B2, N)
    assert jnp.allclose(out2, _reference(x2, params), atol=1e-5), "mismatch (B=250)"

    print("KERNEL_OK")
</pallas_src>

<mosaic_0001>
module attributes {stable_mosaic.version = 11 : i64} {
  func.func @mlp_kernel(%arg0: i32, %arg1: memref<8x128xf32, #tpu.memory_space<vmem>>, %arg2: memref<128x224xf32, #tpu.memory_space<vmem>>, %arg3: memref<1x224xf32, #tpu.memory_space<vmem>>, %arg4: memref<224x224xf32, #tpu.memory_space<vmem>>, %arg5: memref<1x224xf32, #tpu.memory_space<vmem>>, %arg6: memref<224x512xf32, #tpu.memory_space<vmem>>, %arg7: memref<1x512xf32, #tpu.memory_space<vmem>>, %arg8: memref<8x512xf32, #tpu.memory_space<vmem>>) attributes {dimension_semantics = [#tpu.dimension_semantics<parallel>], iteration_bounds = array<i64: 2>, scalar_prefetch = 0 : i64, scratch_operands = 0 : i64, tpu.core_type = #tpu.core_type<tc>, window_params = [{transform_indices = @transform_0, window_bounds = array<i64: 8, 128>}, {pipeline_mode = #tpu.pipeline_mode<synchronous>, transform_indices = @transform_1, window_bounds = array<i64: 128, 224>}, {pipeline_mode = #tpu.pipeline_mode<synchronous>, transform_indices = @transform_2, window_bounds = array<i64: 1, 224>}, {pipeline_mode = #tpu.pipeline_mode<synchronous>, transform_indices = @transform_3, window_bounds = array<i64: 224, 224>}, {pipeline_mode = #tpu.pipeline_mode<synchronous>, transform_indices = @transform_4, window_bounds = array<i64: 1, 224>}, {pipeline_mode = #tpu.pipeline_mode<synchronous>, transform_indices = @transform_5, window_bounds = array<i64: 224, 512>}, {pipeline_mode = #tpu.pipeline_mode<synchronous>, transform_indices = @transform_6, window_bounds = array<i64: 1, 512>}, {transform_indices = @transform_7, window_bounds = array<i64: 8, 512>}]} {
    %c0 = arith.constant 0 : index
    %c0_0 = arith.constant 0 : index
    %0 = vector.load %arg1[%c0, %c0_0] : memref<8x128xf32, #tpu.memory_space<vmem>>, vector<8x128xf32>
    %c0_1 = arith.constant 0 : index
    %c0_2 = arith.constant 0 : index
    %1 = vector.load %arg2[%c0_1, %c0_2] : memref<128x224xf32, #tpu.memory_space<vmem>>, vector<128x224xf32>
    %cst = arith.constant dense<0.000000e+00> : vector<8x224xf32>
    %2 = tpu.matmul %0, %1, %cst {dimension_numbers = #tpu.dot_dimension_numbers<[1], [0], [0], [1], [0, 0, 1, 1], [], []>} : vector<8x128xf32>, vector<128x224xf32>, vector<8x224xf32> -> vector<8x224xf32>
    %c0_3 = arith.constant 0 : index
    %c0_4 = arith.constant 0 : index
    %3 = vector.load %arg3[%c0_3, %c0_4] : memref<1x224xf32, #tpu.memory_space<vmem>>, vector<1x224xf32>
    %4 = vector.broadcast %3 : vector<1x224xf32> to vector<8x224xf32>
    %5 = arith.addf %2, %4 : vector<8x224xf32>
    %6 = math.tanh %5 : vector<8x224xf32>
    %c0_5 = arith.constant 0 : index
    %c0_6 = arith.constant 0 : index
    %7 = vector.load %arg4[%c0_5, %c0_6] : memref<224x224xf32, #tpu.memory_space<vmem>>, vector<224x224xf32>
    %cst_7 = arith.constant dense<0.000000e+00> : vector<8x224xf32>
    %8 = tpu.matmul %6, %7, %cst_7 {dimension_numbers = #tpu.dot_dimension_numbers<[1], [0], [0], [1], [0, 0, 1, 1], [], []>} : vector<8x224xf32>, vector<224x224xf32>, vector<8x224xf32> -> vector<8x224xf32>
    %c0_8 = arith.constant 0 : index
    %c0_9 = arith.constant 0 : index
    %9 = vector.load %arg5[%c0_8, %c0_9] : memref<1x224xf32, #tpu.memory_space<vmem>>, vector<1x224xf32>
    %10 = vector.broadcast %9 : vector<1x224xf32> to vector<8x224xf32>
    %11 = arith.addf %8, %10 : vector<8x224xf32>
    %12 = math.tanh %11 : vector<8x224xf32>
    %c0_10 = arith.constant 0 : index
    %c0_11 = arith.constant 0 : index
    %13 = vector.load %arg6[%c0_10, %c0_11] : memref<224x512xf32, #tpu.memory_space<vmem>>, vector<224x512xf32>
    %cst_12 = arith.constant dense<0.000000e+00> : vector<8x512xf32>
    %14 = tpu.matmul %12, %13, %cst_12 {dimension_numbers = #tpu.dot_dimension_numbers<[1], [0], [0], [1], [0, 0, 1, 1], [], []>} : vector<8x224xf32>, vector<224x512xf32>, vector<8x512xf32> -> vector<8x512xf32>
    %c0_13 = arith.constant 0 : index
    %c0_14 = arith.constant 0 : index
    %15 = vector.load %arg7[%c0_13, %c0_14] : memref<1x512xf32, #tpu.memory_space<vmem>>, vector<1x512xf32>
    %16 = vector.broadcast %15 : vector<1x512xf32> to vector<8x512xf32>
    %17 = arith.addf %14, %16 : vector<8x512xf32>
    %c0_15 = arith.constant 0 : index
    %c0_16 = arith.constant 0 : index
    %18 = vector.load %arg8[%c0_15, %c0_16] : memref<8x512xf32, #tpu.memory_space<vmem>>, vector<8x512xf32>
    tpu.vector_store %arg8[%c0_15, %c0_16], %17 {strides = array<i32>} : memref<8x512xf32, #tpu.memory_space<vmem>>, vector<8x512xf32>,
    return
  }
  func.func @transform_0(%arg0: i32) -> (i32, i32) {
    %c0_i32 = arith.constant 0 : i32
    %c0_i32_0 = arith.constant 0 : i32
    return %arg0, %c0_i32 : i32, i32
  }
  func.func @transform_1(%arg0: i32) -> (i32, i32) {
    %c0_i32 = arith.constant 0 : i32
    %c0_i32_0 = arith.constant 0 : i32
    %c0_i32_1 = arith.constant 0 : i32
    return %c0_i32, %c0_i32_0 : i32, i32
  }
  func.func @transform_2(%arg0: i32) -> (i32, i32) {
    %c0_i32 = arith.constant 0 : i32
    %c0_i32_0 = arith.constant 0 : i32
    %c0_i32_1 = arith.constant 0 : i32
    return %c0_i32, %c0_i32_0 : i32, i32
  }
  func.func @transform_3(%arg0: i32) -> (i32, i32) {
    %c0_i32 = arith.constant 0 : i32
    %c0_i32_0 = arith.constant 0 : i32
    %c0_i32_1 = arith.constant 0 : i32
    return %c0_i32, %c0_i32_0 : i32, i32
  }
  func.func @transform_4(%arg0: i32) -> (i32, i32) {
    %c0_i32 = arith.constant 0 : i32
    %c0_i32_0 = arith.constant 0 : i32
    %c0_i32_1 = arith.constant 0 : i32
    return %c0_i32, %c0_i32_0 : i32, i32
  }
  func.func @transform_5(%arg0: i32) -> (i32, i32) {
    %c0_i32 = arith.constant 0 : i32
    %c0_i32_0 = arith.constant 0 : i32
    %c0_i32_1 = arith.constant 0 : i32
    return %c0_i32, %c0_i32_0 : i32, i32
  }
  func.func @transform_6(%arg0: i32) -> (i32, i32) {
    %c0_i32 = arith.constant 0 : i32
    %c0_i32_0 = arith.constant 0 : i32
    %c0_i32_1 = arith.constant 0 : i32
    return %c0_i32, %c0_i32_0 : i32, i32
  }
  func.func @transform_7(%arg0: i32) -> (i32, i32) {
    %c0_i32 = arith.constant 0 : i32
    %c0_i32_0 = arith.constant 0 : i32
    return %arg0, %c0_i32 : i32, i32
  }
}

</mosaic_0001>

<bundles_post_ra>
// kernel: tpu_custom_call.1
= control target key start
LH: loop header
LB: loop body
LE: loop exit
PB: predicated region body
PF: predicated region fallthrough
CT: control target
= control target key end

     0   :  { %12 = vsyncpa [#allocation3], 0  ;;  %s1769_s0 = inlined_call_operand.vmem [shape: f32[13,128], index: 0, kind: input, shape index: {}]   ;;  %s1770_s1 = inlined_call_operand.vmem [shape: f32[128,224], index: 1, kind: input, shape index: {}]   ;;  %s1771_s2 = inlined_call_operand.vmem [shape: f32[1,224], index: 2, kind: input, shape index: {}]   ;;  %s1772_s3 = inlined_call_operand.vmem [shape: f32[224,224], index: 3, kind: input, shape index: {}]   ;;  %s1773_s4 = inlined_call_operand.vmem [shape: f32[1,224], index: 4, kind: input, shape index: {}]   ;;  %s1774_s5 = inlined_call_operand.hbm [shape: f32[224,512], index: 5, kind: input, shape index: {}]   ;;  %s1775_s6 = inlined_call_operand.vmem [shape: f32[1,512], index: 6, kind: input, shape index: {}]   ;;  %s1776_s7 = inlined_call_operand.hbm [shape: f32[13,512], index: 7, kind: output, shape index: {}]  }
   0x1   :  { %13 = vsyncpa [#allocation4], 0 }
   0x2   :  { %15 = vsyncpa [#allocation4 + $0x1], 0  ;;  %s1340_s24 = smov 0   ;;  %s1342_s25 = smov 0  }
   0x3   :  { %s1344_s26 = smov 0   ;;  %s1346_s27 = smov 0  }
   0x4 LB: > { %s1361_s28 = sadd.s32 4294967295, %s1293_s27   ;;  %s921_s29 = sadd.s32 4294967294, %s1293_s27   ;;  %s1293_s27 = sphi %s1346_s27, %s1792_s27   ;;  %s1289_s26 = sphi %s1344_s26, %s1791_s26   ;;  %s1285_s25 = sphi %s1342_s25, %s1790_s25   ;;  %s1281_s24 = sphi %s1340_s24, %s1789_s24  }
   0x5   : > { %s1365_s30 = sadd.s32 1, %s1293_s27   ;;  %s180_s8 = sadd.s32 1, %s1289_s26 }
   0x6   : > { %s177_s9 = ssub.s32 %s1293_s27, %s1365_s30  ;;  %p190_p0 = scmp.ne.s32.totalorder %s1289_s26, %s1285_s25 }
   0x7   : > { %p178_p1 = scmp.eq.s32.totalorder %s177_s9, 0  ;;  %p191_p2 = scmp.eq.s32.totalorder %s1361_s28, 1 }
   0x8   : > { %p196_p3 = scmp.ne.s32.totalorder %s1285_s25, %s1281_s24  ;;  %p197_p4 = scmp.eq.s32.totalorder %s921_s29, 1 }
   0x9   : > { %s1376_s10 = scalar_select %p178_p1, %s1289_s26, %s180_s8  }
   0xa   : > { %p1378_p5 = por %p191_p2, %p190_p0  ;;  %p1382_p6 = por %p197_p4, %p196_p3 }
   0xb   : > { %p922_p7 = scmp.ge.s32.totalorder %s1293_s27, 1  ;;  %p204_p8 = scmp.lt.s32.totalorder %s1293_s27, 3 }
   0xc   : > { %s1780_s11 = scalar_select %p1378_p5, 1, 0 }
   0xd   : > { %s1781_s12 = scalar_select %p1382_p6, 1, 0 }
   0xe   : > { %p1777_p9 = scmp.eq.s32.totalorder %s1361_s28, 0  ;;  %p1389_p10 = pnand %p922_p7, %p204_p8 }
   0xf   : > { %s1295_s14 = smov [#allocation2]   ;;  %s1199_s19 = scalar_lea.hbm %s1774_s5, 14336 }
  0x10   : > { %s1782_s13 = scalar_select %p1389_p10, 1, 0 }
  0x11   : > { %s228_s15 = sshll.u32 %s1295_s14, 4  ;;  %p1144_p11 = pneg %p1389_p10  ;;  %s229_s15 = int_to_ptr.vmem [resolvable:$true] %s228_s15 }
  0x12   : > { %p1200_p13 = scmp.ne.s32.totalorder %s1774_s5, %s1199_s19  ;;  %p1206_p3 = scmp.lt.u32.totalorder %s1199_s19, %s1774_s5 }
  0x13   : > { %p1397_p12 = pnand %p1777_p9, %p1144_p11 }
  0x15   : > { %p1201_p0 = pneg %p1397_p12 }
  0x17   : > { %p1202_p1 = pnand %p1201_p0, %p1200_p13 }
  0x19   : > { %p1203_p2 = pneg %p1202_p1 }
  0x1b   : > { %p1208_p4 = pnand %p1206_p3, %p1203_p2 }
  0x1d   : > { %1211 = shalt.err (!%p1208_p4)
}
  0x1e   : > { %s1212_s29 = scalar_lea.vmem %s229_s15, 14336  ;;  %p1220_p9 = scmp.lt.s32.totalorder %s229_s15, %s229_s15 }
  0x1f   : > { %p1213_p7 = scmp.ne.s32.totalorder %s229_s15, %s1212_s29  ;;  %p1221_p6 = scmp.lt.s32.totalorder %s1212_s29, %s1212_s29 }
  0x21   : > { %p1215_p8 = pnand %p1213_p7, %p1201_p0  ;;  %p1222_p5 = por %p1221_p6, %p1220_p9 }
  0x23   : > { %p1216_p11 = pneg %p1215_p8 }
  0x25   : > { %p1223_p10 = pnand %p1222_p5, %p1216_p11 }
  0x27   : > { %1226 = shalt.err (!%p1223_p10)
}
  0x28   : > { %s1296_s8 = smov 512   ;;  %s1297_s9 = smov 32  }
  0x29   : > { %1147 = dma.hbm_to_vmem [thread:$0]  (!%p1397_p12), %s1774_s5, 14336, %s229_s15, [#allocation3], %s1296_s8, %s1296_s8, %s1297_s9  }
  0x2a   : > { %p1784_p13 = scmp.ne.s32.totalorder %s1782_s13, 0 }
  0x2b   : > { %p1785_p1 = scmp.eq.s32.totalorder (!%p1784_p13), %s1361_s28, 0 }
  0x2c   : > { %254 = sbr.rel (%p1784_p13) target bundleno = 770 (0x302), region = 48 }
  0x33   : > { %1272 = dma.done.wait (%p1785_p1), [#allocation3], 14336   ;;  %p1786_p0 = pmov %p1785_p1 }
  0x34   : > { %v1298_v0 = vmov 0.0   ;;  %v291_v1 = vld [vmem:[%s1770_s1 + $0x8] sm:$0xff]  ;;  %v293_v2 = vld [vmem:[%s1770_s1 + $0x18] sm:$0xff]  ;;  %v290_v3 = vld [vmem:[%s1770_s1] sm:$0xff]  ;;  %p285_p5 = scmp.lt.s32.totalorder %s1361_s28, 1  ;;  %vm475_vm0 = vcmask 785408  }
  0x35   : > { %1274 = vsyncadd (%p1786_p0), [#allocation3], 4294952960  ;;  %398 = vmatprep.mubr.f32.mxu0 %v1298_v0  ;;  %v938_v4 = vpack.c.bf16 %v293_v2, %v291_v1  ;;  %v292_v5 = vld [vmem:[%s1770_s1 + $0x10] sm:$0xff]  ;;  %v295_v6 = vld [vmem:[%s1770_s1 + $0x28] sm:$0xff]  ;;  %s282_s15 = sand.u32 1, %s1285_s25   ;;  %s937_s22 = sshll.u32 %s1361_s28, 9 }
  0x36   : > { %v297_v7 = vld [vmem:[%s1770_s1 + $0x38] sm:$0xff]  ;;  %v940_v8 = vpack.c.bf16 %v292_v5, %v290_v3  ;;  %v294_v10 = vld [vmem:[%s1770_s1 + $0x20] sm:$0xff]  ;;  %v296_v11 = vld [vmem:[%s1770_s1 + $0x30] sm:$0xff]  ;;  %s286_s14 = scalar_select %p285_p5, %s1361_s28, 1 }
  0x37   : > { %v942_v9 = vpack.c.bf16 %v297_v7, %v295_v6  ;;  %v299_v12 = vld [vmem:[%s1770_s1 + $0x48] sm:$0xff]  ;;  %939 = vmatprep.subr.bf16.mxu0 %v938_v4  ;;  %v301_v13 = vld [vmem:[%s1770_s1 + $0x58] sm:$0xff]  ;;  %v944_v14 = vpack.c.bf16 %v296_v11, %v294_v10  ;;  %v298_v16 = vld [vmem:[%s1770_s1 + $0x40] sm:$0xff]  ;;  %s836_s28 = scalar_lea.sflag [#allocation4], %s282_s15  ;;  %p1787_p9 = scmp.ne.s32.totalorder %s1780_s11, 0 }
  0x38   : > { %941 = vmatpush1.bf16.msra.mxu0 %v940_v8  ;;  %v946_v15 = vpack.c.bf16 %v301_v13, %v299_v12  ;;  %v300_v17 = vld [vmem:[%s1770_s1 + $0x50] sm:$0xff]  ;;  %v303_v18 = vld [vmem:[%s1770_s1 + $0x68] sm:$0xff]  ;;  %v305_v19 = vld [vmem:[%s1770_s1 + $0x78] sm:$0xff]  ;;  %s928_s9 = sshll.u32 %s286_s14, 3  ;;  %s1299_s19 = smov [#allocation5]  }
  0x39   : > { %943 = vmatprep.subr.bf16.mxu0 %v942_v9  ;;  %v948_v20 = vpack.c.bf16 %v300_v17, %v298_v16  ;;  %v950_v21 = vpack.c.bf16 %v305_v19, %v303_v18  ;;  %v302_v22 = vld [vmem:[%s1770_s1 + $0x60] sm:$0xff]  ;;  %v304_v23 = vld [vmem:[%s1770_s1 + $0x70] sm:$0xff]  ;;  %v307_v24 = vld [vmem:[%s1770_s1 + $0x88] sm:$0xff]  ;;  %s288_s21 = scalar_lea.vmem %s1769_s0, %s928_s9  ;;  %s1727_s9 = scalar_lea.hbm %s1776_s7, %s937_s22 }
  0x3a   : > { %v309_v25 = vld [vmem:[%s1770_s1 + $0x98] sm:$0xff]  ;;  %v306_v26 = vld [vmem:[%s1770_s1 + $0x80] sm:$0xff]  ;;  %v308_v27 = vld [vmem:[%s1770_s1 + $0x90] sm:$0xff]  ;;  %v952_v31 = vpack.c.bf16 %v304_v23, %v302_v22  ;;  %s1231_s16 = sshll.u32 %s1299_s19, 4  ;;  %s1232_s16 = int_to_ptr.vmem [resolvable:$false] %s1231_s16 }
  0x3b   : > { %v408_v28 = vld [vmem:[%s1772_s3 + $0x8] sm:$0xff]  ;;  %v410_v29 = vld [vmem:[%s1772_s3 + $0x18] sm:$0xff]  ;;  %v407_v30 = vld [vmem:[%s1772_s3] sm:$0xff]  ;;  %v954_v36 = vpack.c.bf16 %v309_v25, %v307_v24  ;;  %v956_v46 = vpack.c.bf16 %v308_v27, %v306_v26  ;;  %s1233_s20 = scalar_lea.vmem %s1232_s16, 1024 }
  0x3c   : > { %945 = vmatpush1.bf16.msra.mxu0 %v944_v14  ;;  %v970_v32 = vpack.c.bf16 %v410_v29, %v408_v28  ;;  %v409_v33 = vld [vmem:[%s1772_s3 + $0x10] sm:$0xff]  ;;  %v412_v34 = vld [vmem:[%s1772_s3 + $0x28] sm:$0xff]  ;;  %v414_v35 = vld [vmem:[%s1772_s3 + $0x38] sm:$0xff] }
  0x3d   : > { %947 = vmatprep.subr.bf16.mxu0 %v946_v15  ;;  %v972_v37 = vpack.c.bf16 %v409_v33, %v407_v30  ;;  %v974_v38 = vpack.c.bf16 %v414_v35, %v412_v34  ;;  %v411_v39 = vld [vmem:[%s1772_s3 + $0x20] sm:$0xff]  ;;  %v413_v40 = vld [vmem:[%s1772_s3 + $0x30] sm:$0xff]  ;;  %v416_v41 = vld [vmem:[%s1772_s3 + $0x48] sm:$0xff] }
  0x3e   : > { %v311_v42 = vld [vmem:[%s1770_s1 + $0xa8] sm:$0xff]  ;;  %v313_v43 = vld [vmem:[%s1770_s1 + $0xb8] sm:$0xff]  ;;  %971 = vmatprep.subr.bf16.mxu1 %v970_v32  ;;  %v976_v45 = vpack.c.bf16 %v413_v40, %v411_v39  ;;  %v310_v47 = vld [vmem:[%s1770_s1 + $0xa0] sm:$0xff] }
  0x3f   : > { %v418_v44 = vld [vmem:[%s1772_s3 + $0x58] sm:$0xff]  ;;  %973 = vmatpush1.bf16.msra.mxu1 %v972_v37  ;;  %v415_v49 = vld [vmem:[%s1772_s3 + $0x40] sm:$0xff]  ;;  %v417_v50 = vld [vmem:[%s1772_s3 + $0x50] sm:$0xff]  ;;  %v958_v51 = vpack.c.bf16 %v313_v43, %v311_v42 }
  0x40   : > { %949 = vmatpush1.bf16.msra.mxu0 %v948_v20  ;;  %975 = vmatprep.subr.bf16.mxu1 %v974_v38  ;;  %v978_v48 = vpack.c.bf16 %v418_v44, %v416_v41  ;;  %v312_v52 = vld [vmem:[%s1770_s1 + $0xb0] sm:$0xff]  ;;  %v420_v53 = vld [vmem:[%s1772_s3 + $0x68] sm:$0xff]  ;;  %v422_v54 = vld [vmem:[%s1772_s3 + $0x78] sm:$0xff]  ;;  %v980_v57 = vpack.c.bf16 %v417_v50, %v415_v49 }
  0x41   : > { %951 = vmatprep.subr.bf16.mxu0 %v950_v21  ;;  %v315_v55 = vld [vmem:[%s1770_s1 + $0xc8] sm:$0xff]  ;;  %v317_v56 = vld [vmem:[%s1770_s1 + $0xd8] sm:$0xff]  ;;  %v960_v58 = vpack.c.bf16 %v312_v52, %v310_v47  ;;  %v314_v59 = vld [vmem:[%s1770_s1 + $0xc0] sm:$0xff]  ;;  %v982_v60 = vpack.c.bf16 %v422_v54, %v420_v53 }
  0x42   : > { %v419_v61 = vld [vmem:[%s1772_s3 + $0x60] sm:$0xff]  ;;  %v421_v62 = vld [vmem:[%s1772_s3 + $0x70] sm:$0xff]  ;;  %v962_v63 = vpack.c.bf16 %v317_v56, %v315_v55  ;;  %v424_v1 = vld [vmem:[%s1772_s3 + $0x88] sm:$0xff] }
  0x43   : > { %977 = vmatpush1.bf16.msra.mxu1 %v976_v45  ;;  %v316_v0 = vld [vmem:[%s1770_s1 + $0xd0] sm:$0xff]  ;;  %v426_v2 = vld [vmem:[%s1772_s3 + $0x98] sm:$0xff]  ;;  %v319_v3 = vld [vmem:[%s1770_s1 + $0xe8] sm:$0xff]  ;;  %v984_v5 = vpack.c.bf16 %v421_v62, %v419_v61 }
  0x44   : > { %953 = vmatpush1.bf16.msra.mxu0 %v952_v31  ;;  %979 = vmatprep.subr.bf16.mxu1 %v978_v48  ;;  %v321_v4 = vld [vmem:[%s1770_s1 + $0xf8] sm:$0xff]  ;;  %v964_v6 = vpack.c.bf16 %v316_v0, %v314_v59  ;;  %v318_v7 = vld [vmem:[%s1770_s1 + $0xe0] sm:$0xff]  ;;  %v986_v8 = vpack.c.bf16 %v426_v2, %v424_v1  ;;  %v425_v10 = vld [vmem:[%s1772_s3 + $0x90] sm:$0xff] }
  0x45   : > { %955 = vmatprep.subr.bf16.mxu0 %v954_v36  ;;  %v423_v9 = vld [vmem:[%s1772_s3 + $0x80] sm:$0xff]  ;;  %v966_v11 = vpack.c.bf16 %v321_v4, %v319_v3  ;;  %v320_v12 = vld [vmem:[%s1770_s1 + $0xf0] sm:$0xff]  ;;  %v428_v13 = vld [vmem:[%s1772_s3 + $0xa8] sm:$0xff] }
  0x46   : > { %v430_v14 = vld [vmem:[%s1772_s3 + $0xb8] sm:$0xff]  ;;  %v988_v15 = vpack.c.bf16 %v425_v10, %v423_v9  ;;  %v968_v16 = vpack.c.bf16 %v320_v12, %v318_v7  ;;  %v427_v18 = vld [vmem:[%s1772_s3 + $0xa0] sm:$0xff]  ;;  %v429_v19 = vld [vmem:[%s1772_s3 + $0xb0] sm:$0xff] }
  0x47   : > { %981 = vmatpush1.bf16.msra.mxu1 %v980_v57  ;;  %v990_v17 = vpack.c.bf16 %v430_v14, %v428_v13  ;;  %v432_v20 = vld [vmem:[%s1772_s3 + $0xc8] sm:$0xff]  ;;  %v434_v21 = vld [vmem:[%s1772_s3 + $0xd8] sm:$0xff]  ;;  %v992_v22 = vpack.c.bf16 %v429_v19, %v427_v18  ;;  %v289_v23 = vld [vmem:[%s288_s21] sm:$0xff]  ;;  %s927_s21 = sshll.u32 %s282_s15, 5 }
  0x48   : > { %957 = vmatpush1.bf16.msra.mxu0 %v956_v46  ;;  %983 = vmatprep.subr.bf16.mxu1 %v982_v60  ;;  %v994_v24 = vpack.c.bf16 %v434_v21, %v432_v20  ;;  %v431_v25 = vld [vmem:[%s1772_s3 + $0xc0] sm:$0xff]  ;;  %v433_v26 = vld [vmem:[%s1772_s3 + $0xd0] sm:$0xff]  ;;  %v436_v27 = vld [vmem:[%s1772_s3 + $0xe8] sm:$0xff]  ;;  %s284_s23 = scalar_lea.vmem [#allocation5], %s927_s21 }
  0x49   : > { %959 = vmatprep.subr.bf16.mxu0 %v958_v51  ;;  %v438_v28 = vld [vmem:[%s1772_s3 + $0xf8] sm:$0xff]  ;;  %v996_v29 = vpack.c.bf16 %v433_v26, %v431_v25  ;;  %v435_v31 = vld [vmem:[%s1772_s3 + $0xe0] sm:$0xff]  ;;  %v437_v32 = vld [vmem:[%s1772_s3 + $0xf0] sm:$0xff]  ;;  %s850_s29 = sshll.u32 %s284_s23, 4  ;;  %s1729_s29 = int_to_ptr.vmem [resolvable:$true] %s850_s29 }
  0x4a   : > { %v998_v30 = vpack.c.bf16 %v438_v28, %v436_v27  ;;  %v440_v33 = vld [vmem:[%s1772_s3 + $0x108] sm:$0xff]  ;;  %v442_v34 = vld [vmem:[%s1772_s3 + $0x118] sm:$0xff]  ;;  %v1000_v35 = vpack.c.bf16 %v437_v32, %v435_v31  ;;  %v439_v37 = vld [vmem:[%s1772_s3 + $0x100] sm:$0xff]  ;;  %s1227_s18 = scalar_lea.vmem %s1729_s29, 512  ;;  %p1234_p2 = scmp.lt.s32.totalorder %s1729_s29, %s1232_s16 }
  0x4b   : > { %985 = vmatpush1.bf16.msra.mxu1 %v984_v5  ;;  %v1002_v36 = vpack.c.bf16 %v442_v34, %v440_v33  ;;  %v441_v38 = vld [vmem:[%s1772_s3 + $0x110] sm:$0xff]  ;;  %v444_v39 = vld [vmem:[%s1772_s3 + $0x128] sm:$0xff]  ;;  %v446_v40 = vld [vmem:[%s1772_s3 + $0x138] sm:$0xff]  ;;  %p1228_p6 = scmp.ne.s32.totalorder %s1729_s29, %s1227_s18  ;;  %p1235_p3 = scmp.lt.s32.totalorder %s1233_s20, %s1227_s18 }
  0x4c   : > { %961 = vmatpush1.bf16.msra.mxu0 %v960_v58  ;;  %987 = vmatprep.subr.bf16.mxu1 %v986_v8  ;;  %v1004_v41 = vpack.c.bf16 %v441_v38, %v439_v37  ;;  %v1006_v42 = vpack.c.bf16 %v446_v40, %v444_v39  ;;  %v443_v43 = vld [vmem:[%s1772_s3 + $0x120] sm:$0xff]  ;;  %v445_v44 = vld [vmem:[%s1772_s3 + $0x130] sm:$0xff]  ;;  %v448_v46 = vld [vmem:[%s1772_s3 + $0x148] sm:$0xff] }
  0x4d   : > { %963 = vmatprep.subr.bf16.mxu0 %v962_v63  ;;  %v1008_v45 = vpack.c.bf16 %v445_v44, %v443_v43  ;;  %v450_v47 = vld [vmem:[%s1772_s3 + $0x158] sm:$0xff]  ;;  %v447_v49 = vld [vmem:[%s1772_s3 + $0x140] sm:$0xff]  ;;  %v449_v50 = vld [vmem:[%s1772_s3 + $0x150] sm:$0xff]  ;;  %p1229_p10 = pnand %p1228_p6, %p1787_p9  ;;  %p1236_p4 = por %p1235_p3, %p1234_p2 }
  0x4e   : > { %v1010_v48 = vpack.c.bf16 %v450_v47, %v448_v46  ;;  %v1012_v51 = vpack.c.bf16 %v449_v50, %v447_v49  ;;  %v452_v52 = vld [vmem:[%s1772_s3 + $0x168] sm:$0xff]  ;;  %v454_v53 = vld [vmem:[%s1772_s3 + $0x178] sm:$0xff]  ;;  %v451_v55 = vld [vmem:[%s1772_s3 + $0x160] sm:$0xff] }
  0x4f   : > { %989 = vmatpush1.bf16.msra.mxu1 %v988_v15  ;;  %v1014_v54 = vpack.c.bf16 %v454_v53, %v452_v52  ;;  %v453_v56 = vld [vmem:[%s1772_s3 + $0x170] sm:$0xff]  ;;  %v456_v58 = vld [vmem:[%s1772_s3 + $0x188] sm:$0xff]  ;;  %v458_v59 = vld [vmem:[%s1772_s3 + $0x198] sm:$0xff]  ;;  %p1230_p12 = pneg %p1229_p10 }
  0x50   : > { %965 = vmatpush1.bf16.msra.mxu0 %v964_v6  ;;  %991 = vmatprep.subr.bf16.mxu1 %v990_v17  ;;  %v1016_v57 = vpack.c.bf16 %v453_v56, %v451_v55  ;;  %v455_v60 = vld [vmem:[%s1772_s3 + $0x180] sm:$0xff]  ;;  %v1018_v61 = vpack.c.bf16 %v458_v59, %v456_v58  ;;  %v457_v62 = vld [vmem:[%s1772_s3 + $0x190] sm:$0xff]  ;;  %v460_v63 = vld [vmem:[%s1772_s3 + $0x1a8] sm:$0xff] }
  0x51   : > { %967 = vmatprep.subr.bf16.mxu0 %v966_v11  ;;  %v462_v0 = vld [vmem:[%s1772_s3 + $0x1b8] sm:$0xff]  ;;  %v1020_v1 = vpack.c.bf16 %v457_v62, %v455_v60  ;;  %v459_v3 = vld [vmem:[%s1772_s3 + $0x1a0] sm:$0xff]  ;;  %v461_v4 = vld [vmem:[%s1772_s3 + $0x1b0] sm:$0xff]  ;;  %p1237_p7 = pnand %p1236_p4, %p1230_p12 }
  0x52   : > { %v1022_v2 = vpack.c.bf16 %v462_v0, %v460_v63  ;;  %v1024_v5 = vpack.c.bf16 %v461_v4, %v459_v3  ;;  %v553_v6 = vld [vmem:[#allocation2 + $0x8] sm:$0xff]  ;;  %v555_v8 = vld [vmem:[#allocation2 + $0x18] sm:$0xff]  ;;  %v552_v11 = vld [vmem:[#allocation2] sm:$0xff] }
  0x53   : > { %993 = vmatpush1.bf16.msra.mxu1 %v992_v22  ;;  %v557_v7 = vld [vmem:[#allocation2 + $0x28] sm:$0xff]  ;;  %v559_v10 = vld [vmem:[#allocation2 + $0x38] sm:$0xff]  ;;  %v556_v12 = vld [vmem:[#allocation2 + $0x20] sm:$0xff] }
  0x54   : > { %969 = vmatpush1.bf16.msra.mxu0 %v968_v16  ;;  %995 = vmatprep.subr.bf16.mxu1 %v994_v24  ;;  %v1026_v9 = vpack.c.bf16 %v557_v7, %v553_v6  ;;  %v1082_v13 = vpack.c.bf16 %v559_v10, %v555_v8  ;;  %v1028_v14 = vpack.c.bf16 %v556_v12, %v552_v11  ;;  %v561_v15 = vld [vmem:[#allocation2 + $0x48] sm:$0xff]  ;;  %v560_v18 = vld [vmem:[#allocation2 + $0x40] sm:$0xff] }
  0x55   : > { %v565_v16 = vld [vmem:[#allocation2 + $0x68] sm:$0xff]  ;;  %v564_v19 = vld [vmem:[#allocation2 + $0x60] sm:$0xff] }
  0x56   : > { %1027 = vmatprep.subr.bf16.mxu0 %v1026_v9  ;;  %v1030_v17 = vpack.c.bf16 %v565_v16, %v561_v15  ;;  %v1032_v20 = vpack.c.bf16 %v564_v19, %v560_v18  ;;  %v569_v21 = vld [vmem:[#allocation2 + $0x88] sm:$0xff]  ;;  %v568_v24 = vld [vmem:[#allocation2 + $0x80] sm:$0xff]  ;;  %v554_v16 = vld [vmem:[#allocation2 + $0x10] sm:$0xff] }
  0x57   : > { %399 = vmatmul.mubr.f32.vlgmr.msra.gmra.mrb[0].mxu0 %v289_v23  ;;  %997 = vmatpush1.bf16.msra.mxu1 %v996_v29  ;;  %v573_v22 = vld [vmem:[#allocation2 + $0xa8] sm:$0xff]  ;;  %v572_v25 = vld [vmem:[#allocation2 + $0xa0] sm:$0xff]  ;;  %v563_v18 = vld [vmem:[#allocation2 + $0x58] sm:$0xff] }
  0x58   : > { %999 = vmatprep.subr.bf16.mxu1 %v998_v30  ;;  %1029 = vmatpush1.bf16.msra.mxu0 %v1028_v14  ;;  %v1034_v23 = vpack.c.bf16 %v573_v22, %v569_v21  ;;  %v1036_v26 = vpack.c.bf16 %v572_v25, %v568_v24  ;;  %v577_v27 = vld [vmem:[#allocation2 + $0xc8] sm:$0xff]  ;;  %v576_v30 = vld [vmem:[#allocation2 + $0xc0] sm:$0xff]  ;;  %v567_v19 = vld [vmem:[#allocation2 + $0x78] sm:$0xff] }
  0x59   : > { %1031 = vmatprep.subr.bf16.mxu0 %v1030_v17  ;;  %v581_v28 = vld [vmem:[#allocation2 + $0xe8] sm:$0xff]  ;;  %v580_v31 = vld [vmem:[#allocation2 + $0xe0] sm:$0xff]  ;;  %v558_v17 = vld [vmem:[#allocation2 + $0x30] sm:$0xff]  ;;  %v1086_v22 = vpack.c.bf16 %v567_v19, %v563_v18 }
  0x5a   : > { %v1038_v29 = vpack.c.bf16 %v581_v28, %v577_v27  ;;  %v1040_v32 = vpack.c.bf16 %v580_v31, %v576_v30  ;;  %v585_v33 = vld [vmem:[#allocation2 + $0x108] sm:$0xff]  ;;  %v588_v37 = vld [vmem:[#allocation2 + $0x120] sm:$0xff]  ;;  %v566_v24 = vld [vmem:[#allocation2 + $0x70] sm:$0xff] }
  0x5b   : > { %1001 = vmatpush1.bf16.msra.mxu1 %v1000_v35  ;;  %v589_v34 = vld [vmem:[#allocation2 + $0x128] sm:$0xff]  ;;  %v596_v43 = vld [vmem:[#allocation2 + $0x160] sm:$0xff]  ;;  %v575_v27 = vld [vmem:[#allocation2 + $0xb8] sm:$0xff] }
  0x5c   : > { %1003 = vmatprep.subr.bf16.mxu1 %v1002_v36  ;;  %1033 = vmatpush1.bf16.msra.mxu0 %v1032_v20  ;;  %v1042_v35 = vpack.c.bf16 %v589_v34, %v585_v33  ;;  %v584_v36 = vld [vmem:[#allocation2 + $0x100] sm:$0xff]  ;;  %v593_v39 = vld [vmem:[#allocation2 + $0x148] sm:$0xff]  ;;  %v1084_v20 = vpack.c.bf16 %v558_v17, %v554_v16  ;;  %v570_v30 = vld [vmem:[#allocation2 + $0x90] sm:$0xff] }
  0x5d   : > { %1035 = vmatprep.subr.bf16.mxu0 %v1034_v23  ;;  %v1044_v38 = vpack.c.bf16 %v588_v37, %v584_v36  ;;  %v597_v40 = vld [vmem:[#allocation2 + $0x168] sm:$0xff]  ;;  %v604_v49 = vld [vmem:[#allocation2 + $0x1a0] sm:$0xff]  ;;  %v562_v23 = vld [vmem:[#allocation2 + $0x50] sm:$0xff] }
  0x5e   : > { %v605_v46 = vld [vmem:[#allocation2 + $0x1a8] sm:$0xff]  ;;  %v612_v55 = vld [vmem:[#allocation2 + $0x1e0] sm:$0xff]  ;;  %v1088_v28 = vpack.c.bf16 %v566_v24, %v562_v23  ;;  %v574_v31 = vld [vmem:[#allocation2 + $0xb0] sm:$0xff] }
  0x5f   : > { %1005 = vmatpush1.bf16.msra.mxu1 %v1004_v41  ;;  %v1046_v41 = vpack.c.bf16 %v597_v40, %v593_v39  ;;  %v613_v52 = vld [vmem:[#allocation2 + $0x1e8] sm:$0xff]  ;;  %v616_v60 = vld [vmem:[#allocation2 + $0x200] sm:$0xff]  ;;  %v583_v33 = vld [vmem:[#allocation2 + $0xf8] sm:$0xff]  ;;  %v1092_v34 = vpack.c.bf16 %v574_v31, %v570_v30 }
  0x60   : > { %1007 = vmatprep.subr.bf16.mxu1 %v1006_v42  ;;  %1037 = vmatpush1.bf16.msra.mxu0 %v1036_v26  ;;  %v592_v42 = vld [vmem:[#allocation2 + $0x140] sm:$0xff]  ;;  %v621_v58 = vld [vmem:[#allocation2 + $0x228] sm:$0xff]  ;;  %v571_v26 = vld [vmem:[#allocation2 + $0x98] sm:$0xff] }
  0x61   : > { %1039 = vmatprep.subr.bf16.mxu0 %v1038_v29  ;;  %v1048_v44 = vpack.c.bf16 %v596_v43, %v592_v42  ;;  %v625_v63 = vld [vmem:[#allocation2 + $0x248] sm:$0xff]  ;;  %v628_v3 = vld [vmem:[#allocation2 + $0x260] sm:$0xff]  ;;  %v1090_v29 = vpack.c.bf16 %v575_v27, %v571_v26  ;;  %v578_v36 = vld [vmem:[#allocation2 + $0xd0] sm:$0xff] }
  0x62   : > { %v629_v0 = vld [vmem:[#allocation2 + $0x268] sm:$0xff]  ;;  %v322_v8 = vld [vmem:[%s1771_s2] sm:$0x3]  ;;  %v582_v37 = vld [vmem:[#allocation2 + $0xf0] sm:$0xff] }
  0x63   : > { %1009 = vmatpush1.bf16.msra.mxu1 %v1008_v45  ;;  %v601_v45 = vld [vmem:[#allocation2 + $0x188] sm:$0xff]  ;;  %v591_v39 = vld [vmem:[#allocation2 + $0x138] sm:$0xff]  ;;  %v1096_v40 = vpack.c.bf16 %v582_v37, %v578_v36  ;;  %v586_v42 = vld [vmem:[#allocation2 + $0x110] sm:$0xff] }
  0x64   : > { %1011 = vmatprep.subr.bf16.mxu1 %v1010_v48  ;;  %1041 = vmatpush1.bf16.msra.mxu0 %v1040_v32  ;;  %v1050_v47 = vpack.c.bf16 %v605_v46, %v601_v45  ;;  %v600_v48 = vld [vmem:[#allocation2 + $0x180] sm:$0xff]  ;;  %v579_v32 = vld [vmem:[#allocation2 + $0xd8] sm:$0xff]  ;;  %v590_v43 = vld [vmem:[#allocation2 + $0x130] sm:$0xff] }
  0x65   : > { %1043 = vmatprep.subr.bf16.mxu0 %v1042_v35  ;;  %v1052_v50 = vpack.c.bf16 %v604_v49, %v600_v48  ;;  %v1094_v35 = vpack.c.bf16 %v583_v33, %v579_v32  ;;  %v599_v45 = vld [vmem:[#allocation2 + $0x178] sm:$0xff]  ;;  %v1100_v46 = vpack.c.bf16 %v590_v43, %v586_v42  ;;  %v594_v48 = vld [vmem:[#allocation2 + $0x150] sm:$0xff]  ;;  %v632_v19 = vld [vmem:[#allocation2 + $0x280] sm:$0xff] }
  0x66   : > { %v598_v49 = vld [vmem:[#allocation2 + $0x170] sm:$0xff]  ;;  %v635_v16 = vld [vmem:[#allocation2 + $0x298] sm:$0xff]  ;;  %v641_v26 = vld [vmem:[#allocation2 + $0x2c8] sm:$0xff] }
  0x67   : > { %1013 = vmatpush1.bf16.msra.mxu1 %v1012_v51  ;;  %v609_v51 = vld [vmem:[#allocation2 + $0x1c8] sm:$0xff]  ;;  %v639_v18 = vld [vmem:[#allocation2 + $0x2b8] sm:$0xff]  ;;  %v634_v23 = vld [vmem:[#allocation2 + $0x290] sm:$0xff] }
  0x68   : > { %1015 = vmatprep.subr.bf16.mxu1 %v1014_v54  ;;  %1045 = vmatpush1.bf16.msra.mxu0 %v1044_v38  ;;  %v1054_v53 = vpack.c.bf16 %v613_v52, %v609_v51  ;;  %v608_v54 = vld [vmem:[#allocation2 + $0x1c0] sm:$0xff]  ;;  %v587_v38 = vld [vmem:[#allocation2 + $0x118] sm:$0xff]  ;;  %v1104_v52 = vpack.c.bf16 %v598_v49, %v594_v48  ;;  %v638_v24 = vld [vmem:[#allocation2 + $0x2b0] sm:$0xff] }
  0x69   : > { %1047 = vmatprep.subr.bf16.mxu0 %v1046_v41  ;;  %v1056_v56 = vpack.c.bf16 %v612_v55, %v608_v54  ;;  %v1098_v41 = vpack.c.bf16 %v591_v39, %v587_v38  ;;  %v607_v51 = vld [vmem:[#allocation2 + $0x1b8] sm:$0xff]  ;;  %v602_v54 = vld [vmem:[#allocation2 + $0x190] sm:$0xff]  ;;  %v645_v27 = vld [vmem:[#allocation2 + $0x2e8] sm:$0xff] }
  0x6a   : > { %v606_v55 = vld [vmem:[#allocation2 + $0x1b0] sm:$0xff]  ;;  %v647_v30 = vld [vmem:[#allocation2 + $0x2f8] sm:$0xff]  ;;  %v640_v31 = vld [vmem:[#allocation2 + $0x2c0] sm:$0xff] }
  0x6b   : > { %1017 = vmatpush1.bf16.msra.mxu1 %v1016_v57  ;;  %v617_v57 = vld [vmem:[#allocation2 + $0x208] sm:$0xff]  ;;  %v644_v32 = vld [vmem:[#allocation2 + $0x2e0] sm:$0xff]  ;;  %v646_v36 = vld [vmem:[#allocation2 + $0x2f0] sm:$0xff] }
  0x6c   : > { %1019 = vmatprep.subr.bf16.mxu1 %v1018_v61  ;;  %1049 = vmatpush1.bf16.msra.mxu0 %v1048_v44  ;;  %v1058_v59 = vpack.c.bf16 %v621_v58, %v617_v57  ;;  %v620_v61 = vld [vmem:[#allocation2 + $0x220] sm:$0xff]  ;;  %v595_v44 = vld [vmem:[#allocation2 + $0x158] sm:$0xff]  ;;  %v1108_v58 = vpack.c.bf16 %v606_v55, %v602_v54  ;;  %v649_v38 = vld [vmem:[#allocation2 + $0x308] sm:$0xff] }
  0x6d   : > { %1051 = vmatprep.subr.bf16.mxu0 %v1050_v47  ;;  %v1060_v62 = vpack.c.bf16 %v620_v61, %v616_v60  ;;  %v1102_v47 = vpack.c.bf16 %v599_v45, %v595_v44  ;;  %v615_v57 = vld [vmem:[#allocation2 + $0x1f8] sm:$0xff]  ;;  %v610_v60 = vld [vmem:[#allocation2 + $0x1d0] sm:$0xff]  ;;  %v653_v39 = vld [vmem:[#allocation2 + $0x328] sm:$0xff] }
  0x6e   : > { %v614_v61 = vld [vmem:[#allocation2 + $0x1f0] sm:$0xff]  ;;  %v655_v42 = vld [vmem:[#allocation2 + $0x338] sm:$0xff]  ;;  %v648_v43 = vld [vmem:[#allocation2 + $0x300] sm:$0xff] }
  0x6f   : > { %1021 = vmatpush1.bf16.msra.mxu1 %v1020_v1  ;;  %v1062_v1 = vpack.c.bf16 %v629_v0, %v625_v63  ;;  %v623_v63 = vld [vmem:[#allocation2 + $0x238] sm:$0xff]  ;;  %v1112_v0 = vpack.c.bf16 %v614_v61, %v610_v60  ;;  %v652_v44 = vld [vmem:[#allocation2 + $0x320] sm:$0xff]  ;;  %v654_v48 = vld [vmem:[#allocation2 + $0x330] sm:$0xff] }
  0x70   : > { %1023 = vmatprep.subr.bf16.mxu1 %v1022_v2  ;;  %1053 = vmatpush1.bf16.msra.mxu0 %v1052_v50  ;;  %v624_v2 = vld [vmem:[#allocation2 + $0x240] sm:$0xff]  ;;  %v603_v50 = vld [vmem:[#allocation2 + $0x198] sm:$0xff]  ;;  %v657_v49 = vld [vmem:[#allocation2 + $0x348] sm:$0xff] }
  0x71   : > { %1055 = vmatprep.subr.bf16.mxu0 %v1054_v53  ;;  %v1064_v4 = vpack.c.bf16 %v628_v3, %v624_v2  ;;  %v1106_v53 = vpack.c.bf16 %v607_v51, %v603_v50  ;;  %v618_v2 = vld [vmem:[#allocation2 + $0x210] sm:$0xff]  ;;  %v661_v51 = vld [vmem:[#allocation2 + $0x368] sm:$0xff] }
  0x72   : > { %v622_v3 = vld [vmem:[#allocation2 + $0x230] sm:$0xff]  ;;  %v1078_v54 = vpack.c.bf16 %v661_v51, %v657_v49 }
  0x73   : > { %1025 = vmatpush1.bf16.msra.mxu1 %v1024_v5  ;;  %v324_v5 = vlaneseq  ;;  %v662_v60 = vld [vmem:[#allocation2 + $0x370] sm:$0xff] }
  0x74   : > { %1083 = vmatprep.subr.bf16.mxu1 %v1082_v13  ;;  %1057 = vmatpush1.bf16.msra.mxu0 %v1056_v56  ;;  %v611_v56 = vld [vmem:[#allocation2 + $0x1d8] sm:$0xff] }
  0x75   : > { %1059 = vmatprep.subr.bf16.mxu0 %v1058_v59  ;;  %v1694_v6 = vshrl.u32 %v324_v5, 7  ;;  %v1110_v59 = vpack.c.bf16 %v615_v57, %v611_v56  ;;  %v631_v5 = vld [vmem:[#allocation2 + $0x278] sm:$0xff]  ;;  %v656_v56 = vld [vmem:[#allocation2 + $0x340] sm:$0xff] }
  0x76   : > { %v660_v57 = vld [vmem:[#allocation2 + $0x360] sm:$0xff] }
  0x77   : > { %v1697_v7 = vsub.s32 0, %v1694_v6  ;;  %v1703_v9 = vsub.s32 1, %v1694_v6 }
  0x78   : > { %1061 = vmatpush1.bf16.msra.mxu0 %v1060_v62  ;;  %v619_v62 = vld [vmem:[#allocation2 + $0x218] sm:$0xff] }
  0x79   : > { %1063 = vmatprep.subr.bf16.mxu0 %v1062_v1  ;;  %v327_v10 = vrot.slane %v322_v8, %v1697_v7  ;;  %v331_v11 = vrot.slane %v322_v8, %v1703_v9  ;;  %v1114_v1 = vpack.c.bf16 %v623_v63, %v619_v62  ;;  %v1116_v8 = vpack.c.bf16 %v622_v3, %v618_v2  ;;  %v463_v62 = vld [vmem:[%s1773_s4] sm:$0x3] }
  0x7a   : > { %v468_v63 = vrot.slane %v463_v62, %v1697_v7 }
  0x7c   : > { %1065 = vmatpush1.bf16.msra.mxu0 %v1064_v4  ;;  %v627_v4 = vld [vmem:[#allocation2 + $0x258] sm:$0xff] }
 0x12a   : > { %v400_v12 = vpop.f32.mrb[0].mxu0 }
 0x12b   : > { %v401_v13 = vadd.f32 %v400_v12, %v327_v10  ;;  %v402_v14 = vpop.f32.mrb[1].mxu0  ;;  %v1118_v10 = vpack.c.bf16 %v631_v5, %v627_v4  ;;  %v630_v12 = vld [vmem:[#allocation2 + $0x270] sm:$0xff] }
 0x12c   : > { %v403_v15 = vadd.f32 %v402_v14, %v331_v11  ;;  %v626_v11 = vld [vmem:[#allocation2 + $0x250] sm:$0xff]  ;;  %v633_v14 = vld [vmem:[#allocation2 + $0x288] sm:$0xff] }
 0x12e   : > { %1191 = vtanh.f32 %v403_v15  ;;  %v637_v15 = vld [vmem:[#allocation2 + $0x2a8] sm:$0xff] }
 0x12f   : > { %1193 = vtanh.f32 %v401_v13  ;;  %v1120_v13 = vpack.c.bf16 %v630_v12, %v626_v11  ;;  %v1066_v17 = vpack.c.bf16 %v637_v15, %v633_v14  ;;  %v664_v11 = vld [vmem:[%s1775_s6] sm:$0xf]  ;;  %v680_v12 = vsub.s32 3, %v1694_v6 }
 0x130   : > { %v673_v15 = vrot.slane %v664_v11, %v1703_v9 }
 0x131   : > { %1067 = vmatprep.subr.bf16.mxu0 %v1066_v17 }
 0x138   : > { %v1192_v21 = vpop.eup %1191 }
 0x139   : > { %v1194_v25 = vpop.eup %1193  ;;  %929 = vmatprep.mubr.msk.f32.mxu1 %vm475_vm0, %v1192_v21  ;;  %v1122_v21 = vpack.c.bf16 %v639_v18, %v635_v16  ;;  %v681_v16 = vrot.slane %v664_v11, %v680_v12 }
 0x13a   : > { %544 = vmatmul.mubr.f32.vlgmr.msra.gmra.mrb[0].mxu1 %v1194_v25  ;;  %v1124_v25 = vpack.c.bf16 %v638_v24, %v634_v23 }
 0x13b   : > { %1085 = vmatpush1.bf16.msra.mxu1 %v1084_v20  ;;  %v636_v20 = vld [vmem:[#allocation2 + $0x2a0] sm:$0xff] }
 0x13c   : > { %1087 = vmatprep.subr.bf16.mxu1 %v1086_v22  ;;  %v1068_v22 = vpack.c.bf16 %v636_v20, %v632_v19 }
 0x13e   : > { %1069 = vmatpush1.bf16.msra.mxu0 %v1068_v22 }
 0x13f   : > { %1089 = vmatpush1.bf16.msra.mxu1 %v1088_v28  ;;  %v643_v28 = vld [vmem:[#allocation2 + $0x2d8] sm:$0xff] }
 0x140   : > { %1091 = vmatprep.subr.bf16.mxu1 %v1090_v29  ;;  %v1070_v29 = vpack.c.bf16 %v645_v27, %v641_v26  ;;  %v1126_v33 = vpack.c.bf16 %v647_v30, %v643_v28 }
 0x142   : > { %1071 = vmatprep.subr.bf16.mxu0 %v1070_v29 }
 0x143   : > { %1093 = vmatpush1.bf16.msra.mxu1 %v1092_v34  ;;  %v1072_v34 = vpack.c.bf16 %v644_v32, %v640_v31 }
 0x144   : > { %1095 = vmatprep.subr.bf16.mxu1 %v1094_v35  ;;  %v642_v35 = vld [vmem:[#allocation2 + $0x2d0] sm:$0xff] }
 0x145   : > { %v1128_v37 = vpack.c.bf16 %v646_v36, %v642_v35  ;;  %1073 = vmatpush1.bf16.msra.mxu0 %v1072_v34 }
 0x147   : > { %1097 = vmatpush1.bf16.msra.mxu1 %v1096_v40  ;;  %v651_v40 = vld [vmem:[#allocation2 + $0x318] sm:$0xff] }
 0x148   : > { %1099 = vmatprep.subr.bf16.mxu1 %v1098_v41  ;;  %v1074_v41 = vpack.c.bf16 %v653_v39, %v649_v38  ;;  %v1130_v45 = vpack.c.bf16 %v655_v42, %v651_v40 }
 0x14a   : > { %1075 = vmatprep.subr.bf16.mxu0 %v1074_v41 }
 0x14b   : > { %1101 = vmatpush1.bf16.msra.mxu1 %v1100_v46  ;;  %v1076_v46 = vpack.c.bf16 %v652_v44, %v648_v43 }
 0x14c   : > { %1103 = vmatprep.subr.bf16.mxu1 %v1102_v47  ;;  %v650_v47 = vld [vmem:[#allocation2 + $0x310] sm:$0xff] }
 0x14d   : > { %v1132_v50 = vpack.c.bf16 %v654_v48, %v650_v47  ;;  %1077 = vmatpush1.bf16.msra.mxu0 %v1076_v46 }
 0x14e   : > { %1079 = vmatprep.subr.bf16.mxu0 %v1078_v54 }
 0x14f   : > { %1105 = vmatpush1.bf16.msra.mxu1 %v1104_v52  ;;  %v659_v52 = vld [vmem:[#allocation2 + $0x358] sm:$0xff] }
 0x150   : > { %1107 = vmatprep.subr.bf16.mxu1 %v1106_v53  ;;  %v663_v53 = vld [vmem:[#allocation2 + $0x378] sm:$0xff] }
 0x151   : > { %v1134_v55 = vpack.c.bf16 %v663_v53, %v659_v52 }
 0x153   : > { %1109 = vmatpush1.bf16.msra.mxu1 %v1108_v58  ;;  %v658_v58 = vld [vmem:[#allocation2 + $0x350] sm:$0xff] }
 0x154   : > { %1111 = vmatprep.subr.bf16.mxu1 %v1110_v59  ;;  %v1080_v59 = vpack.c.bf16 %v660_v57, %v656_v56  ;;  %v1136_v61 = vpack.c.bf16 %v662_v60, %v658_v58 }
 0x156   : > { %1081 = vmatpush1.bf16.msra.mxu0 %v1080_v59 }
 0x157   : > { %1113 = vmatpush1.bf16.msra.mxu1 %v1112_v0  ;;  %v472_v0 = vrot.slane %v463_v62, %v1703_v9 }
 0x158   : > { %1115 = vmatprep.subr.bf16.mxu1 %v1114_v1 }
 0x15b   : > { %1117 = vmatpush1.bf16.msra.mxu1 %v1116_v8 }
 0x15c   : > { %1119 = vmatprep.subr.bf16.mxu1 %v1118_v10  ;;  %v676_v10 = vsub.s32 2, %v1694_v6 }
 0x15e   : > { %v677_v14 = vrot.slane %v664_v11, %v676_v10 }
 0x15f   : > { %1121 = vmatpush1.bf16.msra.mxu1 %v1120_v13  ;;  %v669_v13 = vrot.slane %v664_v11, %v1697_v7 }
 0x160   : > { %1123 = vmatprep.subr.bf16.mxu1 %v1122_v21 }
 0x163   : > { %1125 = vmatpush1.bf16.msra.mxu1 %v1124_v25 }
 0x164   : > { %1127 = vmatprep.subr.bf16.mxu1 %v1126_v33 }
 0x167   : > { %1129 = vmatpush1.bf16.msra.mxu1 %v1128_v37 }
 0x168   : > { %1131 = vmatprep.subr.bf16.mxu1 %v1130_v45 }
 0x16b   : > { %1133 = vmatpush1.bf16.msra.mxu1 %v1132_v50 }
 0x16c   : > { %1135 = vmatprep.subr.bf16.mxu1 %v1134_v55 }
 0x16f   : > { %1137 = vmatpush1.bf16.msra.mxu1 %v1136_v61 }
 0x20d   : > { %v545_v1 = vpop.f32.mrb[0].mxu1 }
 0x20e   : > { %v546_v2 = vadd.f32 %v545_v1, %v468_v63  ;;  %v547_v3 = vpop.f32.mrb[1].mxu1 }
 0x20f   : > { %v548_v4 = vadd.f32 %v547_v3, %v472_v0 }
 0x211   : > { %1195 = vtanh.f32 %v548_v4 }
 0x212   : > { %1197 = vtanh.f32 %v546_v2 }
 0x21b   : > { %v1196_v5 = vpop.eup %1195 }
 0x21c   : > { %v1198_v8 = vpop.eup %1197  ;;  %930 = vmatprep.mubr.msk.f32.mxu0 %vm475_vm0, %v1196_v5  ;;  %931 = vmatprep.mubr.msk.f32.mxu1 %vm475_vm0, %v1196_v5 }
 0x21d   : > { %754 = vmatmul.mubr.f32.vlgmr.msra.gmra.mrb[2].mxu0 %v1198_v8  ;;  %825 = vmatmul.mubr.f32.vlgmr.msra.gmra.mrb[2].mxu1 %v1198_v8 }
 0x2f0   : > { %v755_v17 = vpop.f32.mrb[2].mxu0  ;;  %v826_v18 = vpop.f32.mrb[2].mxu1 }
 0x2f1   : > { %v756_v19 = vadd.f32 %v755_v17, %v669_v13  ;;  %v827_v20 = vadd.f32 %v826_v18, %v677_v14  ;;  %v757_v21 = vpop.f32.mrb[3].mxu0  ;;  %v828_v22 = vpop.f32.mrb[3].mxu1 }
 0x2f2   : > { %v758_v23 = vadd.f32 %v757_v21, %v673_v15  ;;  %v829_v24 = vadd.f32 %v828_v22, %v681_v16 }
 0x2f3   : > { %831 = vst [vmem:[%s284_s23] sm:$0xff] %v756_v19  ;;  %833 = vst [vmem:[%s284_s23 + $0x10] sm:$0xff] %v827_v20 }
 0x2f4   : > { %832 = vst [vmem:[%s284_s23 + $0x8] sm:$0xff] %v758_v23  ;;  %834 = vst [vmem:[%s284_s23 + $0x18] sm:$0xff] %v829_v24 }
 0x2f5   : > { %1240 = shalt.err (!%p1237_p7)
}
 0x2f6   : > { %s1241_s15 = scalar_lea.hbm %s1727_s9, 512  ;;  %s1245_s13 = scalar_lea.hbm %s1776_s7, 1024 }
 0x2f7   : > { %p1242_p8 = scmp.ne.s32.totalorder %s1727_s9, %s1241_s15  ;;  %p1246_p1 = scmp.lt.u32.totalorder %s1727_s9, %s1776_s7 }
 0x2f8   : > { %p1247_p0 = scmp.lt.u32.totalorder %s1245_s13, %s1241_s15  ;;  %p1249_p6 = scmp.lt.u32.totalorder %s1241_s15, %s1727_s9 }
 0x2f9   : > { %p1243_p11 = pnand %p1242_p8, %p1787_p9 }
 0x2fa   : > { %p1248_p5 = por %p1247_p0, %p1246_p1 }
 0x2fb   : > { %p1244_p13 = pneg %p1243_p11 }
 0x2fc   : > { %p1250_p10 = por %p1249_p6, %p1248_p5 }
 0x2fe   : > { %p1251_p12 = pnand %p1250_p10, %p1244_p13 }
 0x300   : > { %1254 = shalt.err (!%p1251_p12)
}
 0x301   : > { %1142 = dma.vmem_to_hbm [thread:$0]  (%p1787_p9), %s1729_s29, 512, %s1727_s9, %s836_s28  }
 0x302 PF: > { %p1154_p2 = scmp.ge.s32.totalorder %s1293_s27, 2  ;;  %s862_s8 = sand.u32 1, %s1281_s24  }
 0x303   : > { %p1788_p3 = scmp.ne.s32.totalorder %s1781_s12, 0  ;;  %s863_s17 = scalar_lea.sflag [#allocation4], %s862_s8 }
 0x305   : > { %p1149_p4 = pnand %p1154_p2, %p1788_p3 }
 0x307   : > { %1276 = dma.done.wait (!%p1149_p4), %s863_s17, 512  }
 0x308   : > { %1278 = vsyncadd (!%p1149_p4), %s863_s17, 4294966784  ;;  %p18_p7 = scmp.ge.s32.totalorder %s1365_s30, 4   ;;  %s1789_s24 = smov %s1285_s25 }
 0x309   : > { %s1790_s25 = smov %s1289_s26  ;;  %s1791_s26 = smov %s1376_s10 }
 0x30a   : > { %s1792_s27 = smov %s1365_s30  ;;  %20 = sbr.rel (!%p18_p7) target bundleno = 4 (0x4), region = 88 }
 0x311   :  { %868 = vsyncpa [#allocation3], 1 }
 0x312   :  { %870 = vsyncpa [#allocation3 + $0x1], 1 }
 0x313   :  { %871 = vsyncpa [#allocation4], 1 }
 0x314   :  { %873 = vsyncpa [#allocation4 + $0x1], 1 }

</bundles_post_ra>
